<compile_context>
chip_gen: v6e
topology: v6e:2x2x1
jax: 0.10.0
libtpu: 0.0.40
codegen_flags: <defaults>
</compile_context>

<pallas_src>
import math

import jax
import jax.numpy as jnp
from jax.experimental import pallas as pl
from jax.experimental.pallas import tpu as pltpu


def _complex_score_kernel(idx_ref, emb_ref, w_ref, out_ref):
    """Fused gather + ComplEx score for one batch tile.

    idx_ref: (2, TB)  int32 — row 0 = subject ids, row 1 = object ids.
    emb_ref: (2D, Ep) f32   — rows [0, D): re table^T, rows [D, 2D): im table^T.
    w_ref:   (D, 2)   f32   — w^T.
    out_ref: (1, TB)  f32   — per-column (per-example) logit, lane-dense.
    """
    tb = idx_ref.shape[1]
    two_d, ep = emb_ref.shape
    d = two_d // 2

    # One-hot selection matrices (Ep, TB) built from the ids (sublane = entity id).
    ent = jax.lax.broadcasted_iota(jnp.int32, (ep, tb), 0)
    oh_s = (ent == idx_ref[0:1, :]).astype(jnp.float32)  # (Ep, TB)
    oh_o = (ent == idx_ref[1:2, :]).astype(jnp.float32)  # (Ep, TB)

    # MXU gather: (2D, Ep) @ (Ep, TB) -> (2D, TB); exact since weights are 0/1.
    subj = jnp.dot(emb_ref[...], oh_s, preferred_element_type=jnp.float32)
    obj = jnp.dot(emb_ref[...], oh_o, preferred_element_type=jnp.float32)
    s_r, s_i = subj[:d, :], subj[d:, :]   # (D, TB)
    o_r, o_i = obj[:d, :], obj[d:, :]     # (D, TB)

    w0 = w_ref[:, 0:1]  # (D, 1), broadcast over batch lanes
    w1 = w_ref[:, 1:2]

    # Factored score: fewer VALU multiplies than the fully expanded form.
    term = w0 * (s_r * o_r + s_i * o_i) + w1 * (s_r * o_i - s_i * o_r)  # (D, TB)

    # Sublane reduction -> naturally (1, TB), unmasked lane-dense store.
    out_ref[...] = jnp.sum(term, axis=0, keepdims=True)


def _pallas_complex_score(idxs, emb_cat_t, w_t, *, tb=512):
    """idxs: (B, 2) int32; emb_cat_t: (2D, Ep) f32; w_t: (D, 2) f32 -> (B,) f32."""
    B = idxs.shape[0]
    two_d, ep = emb_cat_t.shape
    d = two_d // 2

    # Batch tile: multiple of 128 (lane-dense ids + output); don't over-pad tiny B.
    tb = min(tb, pl.cdiv(B, 128) * 128)
    Bp = pl.cdiv(B, tb) * tb
    if Bp != B:
        # Pad only the tiny index array (padded rows gather entity 0; sliced off).
        idxs = jnp.pad(idxs, ((0, Bp - B), (0, 0)))
    idxs_t = idxs.T  # (2, Bp): ids along lanes

    out = pl.pallas_call(
        _complex_score_kernel,
        out_shape=jax.ShapeDtypeStruct((1, Bp), jnp.float32),
        grid_spec=pltpu.PrefetchScalarGridSpec(
            num_scalar_prefetch=0,
            grid=(Bp // tb,),
            in_specs=[
                pl.BlockSpec((2, tb), lambda i: (0, i)),        # ids (streamed)
                pl.BlockSpec((two_d, ep), lambda i: (0, 0)),    # tables (resident)
                pl.BlockSpec((d, 2), lambda i: (0, 0)),         # w^T   (resident)
            ],
            out_specs=pl.BlockSpec((1, tb), lambda i: (0, i)),  # lane-dense logits
        ),
        compiler_params=pltpu.CompilerParams(
            dimension_semantics=("parallel",),  # batch grid shards across TCs (v7x)
        ),
    )(idxs_t, emb_cat_t, w_t)

    return out[0, :B]


class ComplexVectorPallas:
    """JAX/Pallas port of the PyTorch ComplexVector module."""

    def __init__(self, num_entity, dim, key):
        k_re, k_im, k_w = jax.random.split(key, 3)
        # torch.nn.Embedding default init ~ N(0, 1); w = torch.randn((2, dim)).
        self.embeddings_re = jax.random.normal(k_re, (num_entity, dim), jnp.float32)
        self.embeddings_im = jax.random.normal(k_im, (num_entity, dim), jnp.float32)
        self.w = jax.random.normal(k_w, (2, dim), jnp.float32)

        # Precompute the kernel-side layouts once:
        #   [re; im]^T  -> (2D, Ep) with the entity axis padded to a 128 multiple.
        # TODO(synk): for large entity tables that don't fit VMEM, keep the tables
        # in HBM (memory_space=pl.ANY) and gather rows with double-buffered
        # make_async_copy instead of the one-hot MXU gather used here.
        ep = pl.cdiv(num_entity, 128) * 128
        emb_cat_t = jnp.concatenate(
            [self.embeddings_re.T, self.embeddings_im.T], axis=0)  # (2D, E)
        if ep != num_entity:
            emb_cat_t = jnp.pad(emb_cat_t, ((0, 0), (0, ep - num_entity)))
        self._emb_cat_t = emb_cat_t       # (2D, Ep)
        self._w_t = self.w.T              # (D, 2)

    def __call__(self, idxs):
        # idxs: integer array of shape (..., 2) -> logits of shape (...,)
        batch_shape = idxs.shape[:-1]
        B = int(math.prod(batch_shape)) if batch_shape else 1
        idxs_flat = idxs.reshape(B, 2).astype(jnp.int32)
        logits = _pallas_complex_score(idxs_flat, self._emb_cat_t, self._w_t)
        return logits.reshape(batch_shape)


def _reference_forward(model, idxs):
    """Pure-JAX reference mirroring the PyTorch forward exactly."""
    ent_re = jnp.take(model.embeddings_re, idxs, axis=0)
    ent_im = jnp.take(model.embeddings_im, idxs, axis=0)
    s_r, o_r = ent_re[..., 0, :], ent_re[..., 1, :]
    s_i, o_i = ent_im[..., 0, :], ent_im[..., 1, :]
    w0, w1 = model.w[0], model.w[1]
    return (
        (s_r * w0 * o_r).sum(-1)
        + (s_i * w0 * o_i).sum(-1)
        + (s_r * w1 * o_i).sum(-1)
        - (s_i * w1 * o_r).sum(-1)
    )


if __name__ == "__main__":
    key = jax.random.PRNGKey(0)
    k_model, k_idx = jax.random.split(key)

    num_entity, dim = 50, 128
    batch = 8

    model = ComplexVectorPallas(num_entity, dim, k_model)
    # idxs: (batch, 2) — column 0 = subject entity, column 1 = object entity.
    idxs = jax.random.randint(k_idx, (batch, 2), 0, num_entity, dtype=jnp.int32)

    logits = jax.block_until_ready(model(idxs))

    ref = _reference_forward(model, idxs)
    assert logits.shape == (batch,)
    assert jnp.allclose(logits, ref, atol=1e-3, rtol=1e-3), (logits, ref)

    print("KERNEL_OK")
</pallas_src>

<mosaic_0001>
module attributes {stable_mosaic.version = 11 : i64} {
  func.func @_complex_score_kernel(%arg0: i32, %arg1: memref<2x128xi32, #tpu.memory_space<vmem>>, %arg2: memref<256x128xf32, #tpu.memory_space<vmem>>, %arg3: memref<128x2xf32, #tpu.memory_space<vmem>>, %arg4: memref<1x128xf32, #tpu.memory_space<vmem>>) attributes {dimension_semantics = [#tpu.dimension_semantics<parallel>], iteration_bounds = array<i64: 1>, scalar_prefetch = 0 : i64, scratch_operands = 0 : i64, tpu.core_type = #tpu.core_type<tc>, window_params = [{transform_indices = @transform_0, window_bounds = array<i64: 2, 128>}, {pipeline_mode = #tpu.pipeline_mode<synchronous>, transform_indices = @transform_1, window_bounds = array<i64: 256, 128>}, {pipeline_mode = #tpu.pipeline_mode<synchronous>, transform_indices = @transform_2, window_bounds = array<i64: 128, 2>}, {transform_indices = @transform_3, window_bounds = array<i64: 1, 128>}]} {
    %0 = tpu.iota {dimensions = array<i32: 0>} : vector<128x128xi32>
    %c0 = arith.constant 0 : index
    %c0_0 = arith.constant 0 : index
    %1 = vector.load %arg1[%c0, %c0_0] : memref<2x128xi32, #tpu.memory_space<vmem>>, vector<1x128xi32>
    %2 = vector.broadcast %1 : vector<1x128xi32> to vector<128x128xi32>
    %3 = arith.cmpi eq, %0, %2 : vector<128x128xi32>
    %4 = arith.extui %3 : vector<128x128xi1> to vector<128x128xi32>
    %5 = arith.sitofp %4 : vector<128x128xi32> to vector<128x128xf32>
    %c1 = arith.constant 1 : index
    %c0_1 = arith.constant 0 : index
    %6 = vector.load %arg1[%c1, %c0_1] : memref<2x128xi32, #tpu.memory_space<vmem>>, vector<1x128xi32>
    %7 = vector.broadcast %6 : vector<1x128xi32> to vector<128x128xi32>
    %8 = arith.cmpi eq, %0, %7 : vector<128x128xi32>
    %9 = arith.extui %8 : vector<128x128xi1> to vector<128x128xi32>
    %10 = arith.sitofp %9 : vector<128x128xi32> to vector<128x128xf32>
    %c0_2 = arith.constant 0 : index
    %c0_3 = arith.constant 0 : index
    %11 = vector.load %arg2[%c0_2, %c0_3] : memref<256x128xf32, #tpu.memory_space<vmem>>, vector<256x128xf32>
    %cst = arith.constant dense<0.000000e+00> : vector<256x128xf32>
    %12 = tpu.matmul %11, %5, %cst {dimension_numbers = #tpu.dot_dimension_numbers<[1], [0], [0], [1], [0, 0, 1, 1], [], []>} : vector<256x128xf32>, vector<128x128xf32>, vector<256x128xf32> -> vector<256x128xf32>
    %c0_4 = arith.constant 0 : index
    %c0_5 = arith.constant 0 : index
    %13 = vector.load %arg2[%c0_4, %c0_5] : memref<256x128xf32, #tpu.memory_space<vmem>>, vector<256x128xf32>
    %cst_6 = arith.constant dense<0.000000e+00> : vector<256x128xf32>
    %14 = tpu.matmul %13, %10, %cst_6 {dimension_numbers = #tpu.dot_dimension_numbers<[1], [0], [0], [1], [0, 0, 1, 1], [], []>} : vector<256x128xf32>, vector<128x128xf32>, vector<256x128xf32> -> vector<256x128xf32>
    %15 = vector.extract_strided_slice %12 {offsets = [0, 0], sizes = [128, 128], strides = [1, 1]} : vector<256x128xf32> to vector<128x128xf32>
    %16 = vector.extract_strided_slice %12 {offsets = [128, 0], sizes = [128, 128], strides = [1, 1]} : vector<256x128xf32> to vector<128x128xf32>
    %17 = vector.extract_strided_slice %14 {offsets = [0, 0], sizes = [128, 128], strides = [1, 1]} : vector<256x128xf32> to vector<128x128xf32>
    %18 = vector.extract_strided_slice %14 {offsets = [128, 0], sizes = [128, 128], strides = [1, 1]} : vector<256x128xf32> to vector<128x128xf32>
    %c0_7 = arith.constant 0 : index
    %c0_8 = arith.constant 0 : index
    %19 = vector.load %arg3[%c0_7, %c0_8] : memref<128x2xf32, #tpu.memory_space<vmem>>, vector<128x1xf32>
    %c0_9 = arith.constant 0 : index
    %c1_10 = arith.constant 1 : index
    %20 = vector.load %arg3[%c0_9, %c1_10] : memref<128x2xf32, #tpu.memory_space<vmem>>, vector<128x1xf32>
    %21 = arith.mulf %15, %17 : vector<128x128xf32>
    %22 = arith.mulf %16, %18 : vector<128x128xf32>
    %23 = arith.addf %21, %22 : vector<128x128xf32>
    %24 = vector.broadcast %19 : vector<128x1xf32> to vector<128x128xf32>
    %25 = arith.mulf %24, %23 : vector<128x128xf32>
    %26 = arith.mulf %15, %18 : vector<128x128xf32>
    %27 = arith.mulf %16, %17 : vector<128x128xf32>
    %28 = arith.subf %26, %27 : vector<128x128xf32>
    %29 = vector.broadcast %20 : vector<128x1xf32> to vector<128x128xf32>
    %30 = arith.mulf %29, %28 : vector<128x128xf32>
    %31 = arith.addf %25, %30 : vector<128x128xf32>
    %cst_11 = arith.constant dense<0.000000e+00> : vector<128xf32>
    %32 = vector.multi_reduction <add>, %31, %cst_11 [0] : vector<128x128xf32> to vector<128xf32>
    %33 = vector.shape_cast %32 : vector<128xf32> to vector<1x128xf32>
    %c0_12 = arith.constant 0 : index
    %c0_13 = arith.constant 0 : index
    %34 = vector.load %arg4[%c0_12, %c0_13] : memref<1x128xf32, #tpu.memory_space<vmem>>, vector<1x128xf32>
    tpu.vector_store %arg4[%c0_12, %c0_13], %33 {strides = array<i32>} : memref<1x128xf32, #tpu.memory_space<vmem>>, vector<1x128xf32>,
    return
  }
  func.func @transform_0(%arg0: i32) -> (i32, i32) {
    %c0_i32 = arith.constant 0 : i32
    %c0_i32_0 = arith.constant 0 : i32
    return %c0_i32, %arg0 : i32, i32
  }
  func.func @transform_1(%arg0: i32) -> (i32, i32) {
    %c0_i32 = arith.constant 0 : i32
    %c0_i32_0 = arith.constant 0 : i32
    %c0_i32_1 = arith.constant 0 : i32
    return %c0_i32, %c0_i32_0 : i32, i32
  }
  func.func @transform_2(%arg0: i32) -> (i32, i32) {
    %c0_i32 = arith.constant 0 : i32
    %c0_i32_0 = arith.constant 0 : i32
    %c0_i32_1 = arith.constant 0 : i32
    return %c0_i32, %c0_i32_0 : i32, i32
  }
  func.func @transform_3(%arg0: i32) -> (i32, i32) {
    %c0_i32 = arith.constant 0 : i32
    %c0_i32_0 = arith.constant 0 : i32
    return %c0_i32, %arg0 : i32, i32
  }
}

</mosaic_0001>

<bundles_post_ra>
// kernel: tpu_custom_call.1
= control target key start
LH: loop header
LB: loop body
LE: loop exit
PB: predicated region body
PF: predicated region fallthrough
CT: control target
= control target key end

     0   :  { %8 = vsyncpa [#allocation3], 0  ;;  %s1786_s0 = inlined_call_operand.vmem [shape: s32[2,128], index: 0, kind: input, shape index: {}]   ;;  %s1787_s1 = inlined_call_operand.hbm [shape: f32[256,128], index: 1, kind: input, shape index: {}]   ;;  %s1788_s2 = inlined_call_operand.vmem [shape: f32[128,2], index: 2, kind: input, shape index: {}]   ;;  %s1789_s3 = inlined_call_operand.hbm [shape: f32[1,128], index: 3, kind: output, shape index: {}]  }
   0x1   :  { %9 = vsyncpa [#allocation4], 0  ;;  %s1353_s12 = smov [#allocation2]  }
   0x2   :  { %s17_s13 = sshll.u32 %s1353_s12, 4  ;;  %s18_s13 = int_to_ptr.vmem [resolvable:$true] %s17_s13 }
   0x3   :  { %s1317_s14 = scalar_lea.vmem %s18_s13, 4096  ;;  %p1322_p1 = scmp.lt.s32.totalorder %s18_s13, %s18_s13 }
   0x4   :  { %p1318_p0 = scmp.ne.s32.totalorder %s18_s13, %s1317_s14  ;;  %p1323_p2 = scmp.lt.s32.totalorder %s1317_s14, %s1317_s14 }
   0x6   :  { %p1324_p3 = por %p1323_p2, %p1322_p1 }
   0x8   :  { %p1325_p4 = pnand %p1324_p3, %p1318_p0 }
   0xa   :  { %1328 = shalt.err (!%p1325_p4)
}
   0xb   :  { %s1354_s15 = smov 128   ;;  %s1355_s16 = smov 8  }
   0xc   :  { %23 = dma.hbm_to_vmem [thread:$0]  %s1787_s1, 4096, %s18_s13, [#allocation3], %s1354_s15, %s1354_s15, %s1355_s16  }
   0xd   :  { %1349 = dma.done.wait [#allocation3], 4096  }
   0xe   :  { %1350 = vsyncadd [#allocation3], 4294963200  ;;  %v29_v0 = vlaneseq  ;;  %v1356_v1 = vmov 0   ;;  %v1393_v6 = vld [vmem:[%s1786_s0] ss:$0 sm:$0xff]  ;;  %v1357_v9 = vmov 1.0  }
   0xf   :  { %1304 = vset.pattern.permute.xlu0 %v1356_v1  ;;  %1305 = vset.pattern.permute.xlu1 %v1356_v1  ;;  %v1398_v7 = vld [vmem:[%s1786_s0 + $0x1] ss:$0 sm:$0xff]  ;;  %v153_v22 = vld [vmem:[#allocation2 + $0x8] sm:$0xff]  ;;  %v154_v23 = vld [vmem:[#allocation2 + $0x10] sm:$0xff]  ;;  %v1358_v35 = vmov 1  }
  0x10   :  { %v1385_v2 = vshrl.u32 %v29_v0, 7  ;;  %v152_v21 = vld [vmem:[#allocation2] sm:$0xff]  ;;  %v636_v25 = vld [vmem:[%s1788_s2 + $0x10] sm:$0xff]  ;;  %v155_v26 = vld [vmem:[#allocation2 + $0x18] sm:$0xff] }
  0x11   :  { %1169 = vmatprep.mubr.f32.mxu0 %v152_v21  ;;  %1249 = vmatprep.mubr.f32.mxu1 %v152_v21  ;;  %v634_v24 = vld [vmem:[%s1788_s2] sm:$0xff]  ;;  %v635_v28 = vld [vmem:[%s1788_s2 + $0x8] sm:$0xff]  ;;  %v637_v29 = vld [vmem:[%s1788_s2 + $0x18] sm:$0xff] }
  0x12   :  { %v45_v3 = vadd.s32 120, %v1385_v2  ;;  %v44_v4 = vadd.s32 112, %v1385_v2  ;;  %v43_v5 = vadd.s32 104, %v1385_v2  ;;  %v42_v8 = vadd.s32 96, %v1385_v2  ;;  %v156_v27 = vld [vmem:[#allocation2 + $0x20] sm:$0xff]  ;;  %700 = vperm.xlu0 %1304, %v634_v24   ;;  %710 = vperm.xlu1 %1305, %v636_v25   ;;  %v157_v30 = vld [vmem:[#allocation2 + $0x28] sm:$0xff] }
  0x13   :  { %v41_v10 = vadd.s32 88, %v1385_v2  ;;  %v40_v11 = vadd.s32 80, %v1385_v2  ;;  %v39_v12 = vadd.s32 72, %v1385_v2  ;;  %v38_v13 = vadd.s32 64, %v1385_v2  ;;  %v158_v31 = vld [vmem:[#allocation2 + $0x30] sm:$0xff]  ;;  %v638_v32 = vld [vmem:[%s1788_s2 + $0x20] sm:$0xff] }
  0x14   :  { %vm66_vm0 = vcmp.eq.s32.totalorder %v45_v3, %v1393_v6  ;;  %vm119_vm1 = vcmp.eq.s32.totalorder %v45_v3, %v1398_v7  ;;  %vm65_vm2 = vcmp.eq.s32.totalorder %v44_v4, %v1393_v6  ;;  %vm118_vm3 = vcmp.eq.s32.totalorder %v44_v4, %v1398_v7  ;;  %v159_v33 = vld [vmem:[#allocation2 + $0x38] sm:$0xff]  ;;  %v160_v34 = vld [vmem:[#allocation2 + $0x40] sm:$0xff]  ;;  %v161_v36 = vld [vmem:[#allocation2 + $0x48] sm:$0xff] }
  0x15   :  { %1137 = vmatprep.subr.msk.mxu0 %vm66_vm0, %v1357_v9  ;;  %1217 = vmatprep.subr.msk.mxu1 %vm119_vm1, %v1357_v9  ;;  %vm64_vm4 = vcmp.eq.s32.totalorder %v43_v5, %v1393_v6  ;;  %vm117_vm5 = vcmp.eq.s32.totalorder %v43_v5, %v1398_v7  ;;  %vm63_vm6 = vcmp.eq.s32.totalorder %v42_v8, %v1393_v6  ;;  %v37_v14 = vadd.s32 56, %v1385_v2  ;;  %v162_v37 = vld [vmem:[#allocation2 + $0x50] sm:$0xff]  ;;  %v163_v38 = vld [vmem:[#allocation2 + $0x58] sm:$0xff]  ;;  %v164_v39 = vld [vmem:[#allocation2 + $0x60] sm:$0xff] }
  0x16   :  { %1138 = vmatpush3.msk.msra.mxu0 %vm66_vm0, %v1357_v9  ;;  %1218 = vmatpush3.msk.msra.mxu1 %vm119_vm1, %v1357_v9  ;;  %vm116_vm7 = vcmp.eq.s32.totalorder %v42_v8, %v1398_v7  ;;  %vm62_vm8 = vcmp.eq.s32.totalorder %v41_v10, %v1393_v6  ;;  %vm115_vm9 = vcmp.eq.s32.totalorder %v41_v10, %v1398_v7  ;;  %v36_v15 = vadd.s32 48, %v1385_v2  ;;  %v639_v40 = vld [vmem:[%s1788_s2 + $0x28] sm:$0xff]  ;;  %v166_v42 = vld [vmem:[#allocation2 + $0x70] sm:$0xff]  ;;  %v167_v44 = vld [vmem:[#allocation2 + $0x78] sm:$0xff] }
  0x17   :  { %1139 = vmatprep.subr.msk.mxu0 %vm65_vm2, %v1357_v9  ;;  %1219 = vmatprep.subr.msk.mxu1 %vm118_vm3, %v1357_v9  ;;  %vm61_vm10 = vcmp.eq.s32.totalorder %v40_v11, %v1393_v6  ;;  %vm114_vm11 = vcmp.eq.s32.totalorder %v40_v11, %v1398_v7  ;;  %vm60_vm12 = vcmp.eq.s32.totalorder %v39_v12, %v1393_v6  ;;  %v35_v16 = vadd.s32 40, %v1385_v2  ;;  %v165_v41 = vld [vmem:[#allocation2 + $0x68] sm:$0xff]  ;;  %v640_v43 = vld [vmem:[%s1788_s2 + $0x30] sm:$0xff]  ;;  %v168_v45 = vld [vmem:[#allocation2 + $0x80] sm:$0xff] }
  0x18   :  { %1140 = vmatpush3.msk.msra.mxu0 %vm65_vm2, %v1357_v9  ;;  %1220 = vmatpush3.msk.msra.mxu1 %vm118_vm3, %v1357_v9  ;;  %vm113_vm13 = vcmp.eq.s32.totalorder %v39_v12, %v1398_v7  ;;  %vm59_vm14 = vcmp.eq.s32.totalorder %v38_v13, %v1393_v6  ;;  %vm112_vm15 = vcmp.eq.s32.totalorder %v38_v13, %v1398_v7  ;;  %v34_v17 = vadd.s32 32, %v1385_v2  ;;  %v641_v46 = vld [vmem:[%s1788_s2 + $0x38] sm:$0xff]  ;;  %v169_v47 = vld [vmem:[#allocation2 + $0x88] sm:$0xff]  ;;  %v170_v48 = vld [vmem:[#allocation2 + $0x90] sm:$0xff] }
  0x19   :  { %1141 = vmatprep.subr.msk.mxu0 %vm64_vm4, %v1357_v9  ;;  %1221 = vmatprep.subr.msk.mxu1 %vm117_vm5, %v1357_v9  ;;  %vm58_vm0 = vcmp.eq.s32.totalorder %v37_v14, %v1393_v6  ;;  %vm111_vm1 = vcmp.eq.s32.totalorder %v37_v14, %v1398_v7  ;;  %vm57_vm2 = vcmp.eq.s32.totalorder %v36_v15, %v1393_v6  ;;  %v33_v18 = vadd.s32 24, %v1385_v2  ;;  %v642_v49 = vld [vmem:[%s1788_s2 + $0x40] sm:$0xff]  ;;  %v171_v50 = vld [vmem:[#allocation2 + $0x98] sm:$0xff]  ;;  %v643_v52 = vld [vmem:[%s1788_s2 + $0x48] sm:$0xff] }
  0x1a   :  { %1142 = vmatpush3.msk.msra.mxu0 %vm64_vm4, %v1357_v9  ;;  %1222 = vmatpush3.msk.msra.mxu1 %vm117_vm5, %v1357_v9  ;;  %vm110_vm3 = vcmp.eq.s32.totalorder %v36_v15, %v1398_v7  ;;  %vm56_vm4 = vcmp.eq.s32.totalorder %v35_v16, %v1393_v6  ;;  %vm109_vm5 = vcmp.eq.s32.totalorder %v35_v16, %v1398_v7  ;;  %v32_v19 = vadd.s32 16, %v1385_v2  ;;  %v172_v51 = vld [vmem:[#allocation2 + $0xa0] sm:$0xff]  ;;  %v173_v53 = vld [vmem:[#allocation2 + $0xa8] sm:$0xff]  ;;  %v174_v54 = vld [vmem:[#allocation2 + $0xb0] sm:$0xff] }
  0x1b   :  { %1143 = vmatprep.subr.msk.mxu0 %vm63_vm6, %v1357_v9  ;;  %1223 = vmatprep.subr.msk.mxu1 %vm116_vm7, %v1357_v9  ;;  %v31_v20 = vadd.s32 8, %v1385_v2  ;;  %v644_v55 = vld [vmem:[%s1788_s2 + $0x50] sm:$0xff]  ;;  %v175_v56 = vld [vmem:[#allocation2 + $0xb8] sm:$0xff]  ;;  %v176_v57 = vld [vmem:[#allocation2 + $0xc0] sm:$0xff] }
  0x1c   :  { %1144 = vmatpush3.msk.msra.mxu0 %vm63_vm6, %v1357_v9  ;;  %1224 = vmatpush3.msk.msra.mxu1 %vm116_vm7, %v1357_v9  ;;  %vm55_vm6 = vcmp.eq.s32.totalorder %v34_v17, %v1393_v6  ;;  %vm108_vm7 = vcmp.eq.s32.totalorder %v34_v17, %v1398_v7  ;;  %v645_v58 = vld [vmem:[%s1788_s2 + $0x58] sm:$0xff]  ;;  %v177_v59 = vld [vmem:[#allocation2 + $0xc8] sm:$0xff]  ;;  %v178_v60 = vld [vmem:[#allocation2 + $0xd0] sm:$0xff] }
  0x1d   :  { %1145 = vmatprep.subr.msk.mxu0 %vm62_vm8, %v1357_v9  ;;  %1225 = vmatprep.subr.msk.mxu1 %vm115_vm9, %v1357_v9  ;;  %v646_v61 = vld [vmem:[%s1788_s2 + $0x60] sm:$0xff]  ;;  %v179_v62 = vld [vmem:[#allocation2 + $0xd8] sm:$0xff]  ;;  %v647_v0 = vld [vmem:[%s1788_s2 + $0x68] sm:$0xff] }
  0x1e   :  { %1146 = vmatpush3.msk.msra.mxu0 %vm62_vm8, %v1357_v9  ;;  %1226 = vmatpush3.msk.msra.mxu1 %vm115_vm9, %v1357_v9  ;;  %vm54_vm8 = vcmp.eq.s32.totalorder %v33_v18, %v1393_v6  ;;  %vm107_vm9 = vcmp.eq.s32.totalorder %v33_v18, %v1398_v7  ;;  %v180_v63 = vld [vmem:[#allocation2 + $0xe0] sm:$0xff]  ;;  %v648_v3 = vld [vmem:[%s1788_s2 + $0x70] sm:$0xff]  ;;  %v183_v4 = vld [vmem:[#allocation2 + $0xf8] sm:$0xff] }
  0x1f   :  { %1147 = vmatprep.subr.msk.mxu0 %vm61_vm10, %v1357_v9  ;;  %1227 = vmatprep.subr.msk.mxu1 %vm114_vm11, %v1357_v9  ;;  %v649_v5 = vld [vmem:[%s1788_s2 + $0x78] sm:$0xff]  ;;  %s1359_s2 = smov [#allocation5]  }
  0x20   :  { %1148 = vmatpush3.msk.msra.mxu0 %vm61_vm10, %v1357_v9  ;;  %1228 = vmatpush3.msk.msra.mxu1 %vm114_vm11, %v1357_v9  ;;  %vm53_vm10 = vcmp.eq.s32.totalorder %v32_v19, %v1393_v6  ;;  %vm106_vm11 = vcmp.eq.s32.totalorder %v32_v19, %v1398_v7  ;;  %s966_s24 = sshll.u32 %s1359_s2, 4  ;;  %s967_s24 = int_to_ptr.vmem [resolvable:$true] %s966_s24 }
  0x21   :  { %1149 = vmatprep.subr.msk.mxu0 %vm60_vm12, %v1357_v9  ;;  %1229 = vmatprep.subr.msk.mxu1 %vm113_vm13, %v1357_v9  ;;  %s1329_s25 = scalar_lea.vmem %s967_s24, 16  ;;  %s1333_s26 = scalar_lea.vmem %s967_s24, 32 }
  0x22   :  { %1150 = vmatpush3.msk.msra.mxu0 %vm60_vm12, %v1357_v9  ;;  %1230 = vmatpush3.msk.msra.mxu1 %vm113_vm13, %v1357_v9  ;;  %vm52_vm12 = vcmp.eq.s32.totalorder %v31_v20, %v1393_v6  ;;  %vm105_vm13 = vcmp.eq.s32.totalorder %v31_v20, %v1398_v7  ;;  %p1330_p5 = scmp.ne.s32.totalorder %s967_s24, %s1329_s25  ;;  %p1334_p6 = scmp.lt.s32.totalorder %s967_s24, %s967_s24 }
  0x23   :  { %1151 = vmatprep.subr.msk.mxu0 %vm59_vm14, %v1357_v9  ;;  %1231 = vmatprep.subr.msk.mxu1 %vm112_vm15, %v1357_v9  ;;  %p1335_p7 = scmp.lt.s32.totalorder %s1333_s26, %s1329_s25 }
  0x24   :  { %1152 = vmatpush3.msk.msra.mxu0 %vm59_vm14, %v1357_v9  ;;  %1232 = vmatpush3.msk.msra.mxu1 %vm112_vm15, %v1357_v9  ;;  %vm51_vm14 = vcmp.eq.s32.totalorder %v1385_v2, %v1393_v6  ;;  %vm104_vm15 = vcmp.eq.s32.totalorder %v1385_v2, %v1398_v7  ;;  %v182_v2 = vld [vmem:[#allocation2 + $0xf0] sm:$0xff] }
  0x25   :  { %1153 = vmatprep.subr.msk.mxu0 %vm58_vm0, %v1357_v9  ;;  %1233 = vmatprep.subr.msk.mxu1 %vm111_vm1, %v1357_v9  ;;  %p1336_p8 = por %p1335_p7, %p1334_p6 }
  0x26   :  { %1154 = vmatpush3.msk.msra.mxu0 %vm58_vm0, %v1357_v9  ;;  %1234 = vmatpush3.msk.msra.mxu1 %vm111_vm1, %v1357_v9 }
  0x27   :  { %1155 = vmatprep.subr.msk.mxu0 %vm57_vm2, %v1357_v9  ;;  %1235 = vmatprep.subr.msk.mxu1 %vm110_vm3, %v1357_v9  ;;  %p1337_p9 = pnand %p1336_p8, %p1330_p5 }
  0x28   :  { %1156 = vmatpush3.msk.msra.mxu0 %vm57_vm2, %v1357_v9  ;;  %1236 = vmatpush3.msk.msra.mxu1 %vm110_vm3, %v1357_v9 }
  0x29   :  { %1157 = vmatprep.subr.msk.mxu0 %vm56_vm4, %v1357_v9  ;;  %1237 = vmatprep.subr.msk.mxu1 %vm109_vm5, %v1357_v9 }
  0x2a   :  { %1158 = vmatpush3.msk.msra.mxu0 %vm56_vm4, %v1357_v9  ;;  %1238 = vmatpush3.msk.msra.mxu1 %vm109_vm5, %v1357_v9 }
  0x2b   :  { %1159 = vmatprep.subr.msk.mxu0 %vm55_vm6, %v1357_v9  ;;  %1239 = vmatprep.subr.msk.mxu1 %vm108_vm7, %v1357_v9 }
  0x2c   :  { %1160 = vmatpush3.msk.msra.mxu0 %vm55_vm6, %v1357_v9  ;;  %1240 = vmatpush3.msk.msra.mxu1 %vm108_vm7, %v1357_v9 }
  0x2d   :  { %1161 = vmatprep.subr.msk.mxu0 %vm54_vm8, %v1357_v9  ;;  %1241 = vmatprep.subr.msk.mxu1 %vm107_vm9, %v1357_v9 }
  0x2e   :  { %1162 = vmatpush3.msk.msra.mxu0 %vm54_vm8, %v1357_v9  ;;  %1242 = vmatpush3.msk.msra.mxu1 %vm107_vm9, %v1357_v9 }
  0x2f   :  { %1163 = vmatprep.subr.msk.mxu0 %vm53_vm10, %v1357_v9  ;;  %1243 = vmatprep.subr.msk.mxu1 %vm106_vm11, %v1357_v9 }
  0x30   :  { %1164 = vmatpush3.msk.msra.mxu0 %vm53_vm10, %v1357_v9  ;;  %1244 = vmatpush3.msk.msra.mxu1 %vm106_vm11, %v1357_v9 }
  0x31   :  { %1165 = vmatprep.subr.msk.mxu0 %vm52_vm12, %v1357_v9  ;;  %1245 = vmatprep.subr.msk.mxu1 %vm105_vm13, %v1357_v9 }
  0x32   :  { %1166 = vmatpush3.msk.msra.mxu0 %vm52_vm12, %v1357_v9  ;;  %1246 = vmatpush3.msk.msra.mxu1 %vm105_vm13, %v1357_v9 }
  0x33   :  { %1167 = vmatprep.subr.msk.mxu0 %vm51_vm14, %v1357_v9  ;;  %1247 = vmatprep.subr.msk.mxu1 %vm104_vm15, %v1357_v9 }
  0x34   :  { %1168 = vmatpush3.msk.msra.mxu0 %vm51_vm14, %v1357_v9  ;;  %1248 = vmatpush3.msk.msra.mxu1 %vm104_vm15, %v1357_v9 }
  0x35   :  { %1170 = vmatmul.mubr.f32.vlgmr.msra.gmra.mxu0 %v153_v22  ;;  %1250 = vmatmul.mubr.f32.vlgmr.msra.gmra.mxu1 %v153_v22 }
  0x36   :  { %1172 = vmatprep.mubr.f32.mxu0 %v154_v23  ;;  %1252 = vmatprep.mubr.f32.mxu1 %v154_v23 }
  0x37   :  { %705 = vperm.xlu0 %1304, %v635_v28   ;;  %715 = vperm.xlu1 %1305, %v637_v29  }
  0x39   :  { %1173 = vmatmul.mubr.f32.gmra.mxu0 %v155_v26  ;;  %1253 = vmatmul.mubr.f32.gmra.mxu1 %v155_v26 }
  0x3a   :  { %1175 = vmatprep.mubr.f32.mxu0 %v156_v27  ;;  %1255 = vmatprep.mubr.f32.mxu1 %v156_v27 }
  0x3b   :  { %720 = vperm.xlu0 %1304, %v638_v32   ;;  %1306 = vset.pattern.permute.xlu1 %v1358_v35 }
  0x3c   :  { %843 = vperm.xlu1 %1306, %v634_v24  }
  0x3d   :  { %1176 = vmatmul.mubr.f32.gmra.mxu0 %v157_v30  ;;  %1256 = vmatmul.mubr.f32.gmra.mxu1 %v157_v30 }
  0x3e   :  { %1178 = vmatprep.mubr.f32.mxu0 %v158_v31  ;;  %1258 = vmatprep.mubr.f32.mxu1 %v158_v31 }
  0x3f   :  { %1307 = vset.pattern.permute.xlu0 %v1358_v35 }
  0x40   :  { %847 = vperm.xlu0 %1307, %v635_v28   ;;  %851 = vperm.xlu1 %1306, %v636_v25  }
  0x41   :  { %1179 = vmatmul.mubr.f32.gmra.mxu0 %v159_v33  ;;  %1259 = vmatmul.mubr.f32.gmra.mxu1 %v159_v33 }
  0x42   :  { %1181 = vmatprep.mubr.f32.mxu0 %v160_v34  ;;  %1261 = vmatprep.mubr.f32.mxu1 %v160_v34 }
  0x44   :  { %859 = vperm.xlu0 %1307, %v638_v32   ;;  %855 = vperm.xlu1 %1306, %v637_v29  }
  0x45   :  { %1182 = vmatmul.mubr.f32.gmra.mxu0 %v161_v36  ;;  %1262 = vmatmul.mubr.f32.gmra.mxu1 %v161_v36 }
  0x46   :  { %1184 = vmatprep.mubr.f32.mxu0 %v162_v37  ;;  %1264 = vmatprep.mubr.f32.mxu1 %v162_v37 }
  0x48   :  { %863 = vperm.xlu0 %1307, %v639_v40   ;;  %1308 = vset.pattern.permute.xlu1 %v1356_v1  ;;  %v181_v1 = vld [vmem:[#allocation2 + $0xe8] sm:$0xff] }
  0x49   :  { %1185 = vmatmul.mubr.f32.gmra.mxu0 %v163_v38  ;;  %1265 = vmatmul.mubr.f32.gmra.mxu1 %v163_v38 }
  0x4a   :  { %1187 = vmatprep.mubr.f32.mxu0 %v164_v39  ;;  %1267 = vmatprep.mubr.f32.mxu1 %v164_v39 }
  0x4b   :  { %725 = vperm.xlu1 %1308, %v639_v40  }
  0x4c   :  { %867 = vperm.xlu0 %1307, %v640_v43  }
  0x4d   :  { %1188 = vmatmul.mubr.f32.gmra.mxu0 %v165_v41  ;;  %1268 = vmatmul.mubr.f32.gmra.mxu1 %v165_v41 }
  0x4e   :  { %1190 = vmatprep.mubr.f32.mxu0 %v166_v42  ;;  %1270 = vmatprep.mubr.f32.mxu1 %v166_v42 }
  0x4f   :  { %730 = vperm.xlu1 %1308, %v640_v43  }
  0x50   :  { %871 = vperm.xlu0 %1307, %v641_v46  }
  0x51   :  { %1191 = vmatmul.mubr.f32.gmra.mxu0 %v167_v44  ;;  %1271 = vmatmul.mubr.f32.gmra.mxu1 %v167_v44 }
  0x52   :  { %1193 = vmatprep.mubr.f32.mxu0 %v168_v45  ;;  %1273 = vmatprep.mubr.f32.mxu1 %v168_v45 }
  0x53   :  { %735 = vperm.xlu1 %1308, %v641_v46  }
  0x54   :  { %875 = vperm.xlu0 %1307, %v642_v49  }
  0x55   :  { %1194 = vmatmul.mubr.f32.gmra.mxu0 %v169_v47  ;;  %1274 = vmatmul.mubr.f32.gmra.mxu1 %v169_v47 }
  0x56   :  { %1196 = vmatprep.mubr.f32.mxu0 %v170_v48  ;;  %1276 = vmatprep.mubr.f32.mxu1 %v170_v48 }
  0x57   :  { %740 = vperm.xlu1 %1308, %v642_v49  }
  0x58   :  { %879 = vperm.xlu0 %1307, %v643_v52  }
  0x59   :  { %1197 = vmatmul.mubr.f32.gmra.mxu0 %v171_v50  ;;  %1277 = vmatmul.mubr.f32.gmra.mxu1 %v171_v50 }
  0x5a   :  { %1199 = vmatprep.mubr.f32.mxu0 %v172_v51  ;;  %1279 = vmatprep.mubr.f32.mxu1 %v172_v51 }
  0x5b   :  { %745 = vperm.xlu1 %1308, %v643_v52  }
  0x5c   :  { %883 = vperm.xlu0 %1307, %v644_v55  }
  0x5d   :  { %1200 = vmatmul.mubr.f32.gmra.mxu0 %v173_v53  ;;  %1280 = vmatmul.mubr.f32.gmra.mxu1 %v173_v53 }
  0x5e   :  { %1202 = vmatprep.mubr.f32.mxu0 %v174_v54  ;;  %1282 = vmatprep.mubr.f32.mxu1 %v174_v54 }
  0x5f   :  { %750 = vperm.xlu1 %1308, %v644_v55  }
  0x60   :  { %887 = vperm.xlu0 %1307, %v645_v58  }
  0x61   :  { %1203 = vmatmul.mubr.f32.gmra.mxu0 %v175_v56  ;;  %1283 = vmatmul.mubr.f32.gmra.mxu1 %v175_v56 }
  0x62   :  { %1205 = vmatprep.mubr.f32.mxu0 %v176_v57  ;;  %1285 = vmatprep.mubr.f32.mxu1 %v176_v57 }
  0x63   :  { %755 = vperm.xlu1 %1308, %v645_v58  }
  0x64   :  { %891 = vperm.xlu0 %1307, %v646_v61  }
  0x65   :  { %1206 = vmatmul.mubr.f32.gmra.mxu0 %v177_v59  ;;  %1286 = vmatmul.mubr.f32.gmra.mxu1 %v177_v59 }
  0x66   :  { %1208 = vmatprep.mubr.f32.mxu0 %v178_v60  ;;  %1288 = vmatprep.mubr.f32.mxu1 %v178_v60 }
  0x67   :  { %760 = vperm.xlu1 %1308, %v646_v61  }
  0x68   :  { %895 = vperm.xlu0 %1307, %v647_v0  }
  0x69   :  { %1209 = vmatmul.mubr.f32.gmra.mxu0 %v179_v62  ;;  %1289 = vmatmul.mubr.f32.gmra.mxu1 %v179_v62 }
  0x6a   :  { %1211 = vmatprep.mubr.f32.mxu0 %v180_v63  ;;  %1291 = vmatprep.mubr.f32.mxu1 %v180_v63 }
  0x6b   :  { %765 = vperm.xlu1 %1308, %v647_v0  }
  0x6c   :  { %899 = vperm.xlu0 %1307, %v648_v3  }
  0x6d   :  { %1212 = vmatmul.mubr.f32.gmra.mxu0 %v181_v1  ;;  %1292 = vmatmul.mubr.f32.gmra.mxu1 %v181_v1 }
  0x6e   :  { %1214 = vmatprep.mubr.f32.mxu0 %v182_v2  ;;  %1294 = vmatprep.mubr.f32.mxu1 %v182_v2 }
  0x6f   :  { %770 = vperm.xlu1 %1308, %v648_v3  }
  0x70   :  { %903 = vperm.xlu0 %1307, %v649_v5  }
  0x71   :  { %1215 = vmatmul.mubr.f32.gmra.mxu0 %v183_v4  ;;  %1295 = vmatmul.mubr.f32.gmra.mxu1 %v183_v4 }
  0x73   :  { %775 = vperm.xlu1 %1308, %v649_v5  }
  0x8d   :  { %v1559_v6 = vpop.permute.xlu0 %700  ;;  %v1561_v7 = vpop.permute.xlu1 %710 }
  0xb2   :  { %v1563_v8 = vpop.permute.xlu0 %705  ;;  %v1565_v9 = vpop.permute.xlu1 %715 }
  0xb6   :  { %v1567_v10 = vpop.permute.xlu0 %720 }
  0xb7   :  { %v1569_v11 = vpop.permute.xlu1 %843 }
  0xbb   :  { %v1571_v12 = vpop.permute.xlu0 %847  ;;  %v1573_v13 = vpop.permute.xlu1 %851 }
  0xbf   :  { %v1577_v18 = vpop.permute.xlu0 %859  ;;  %v1579_v19 = vpop.permute.xlu1 %855 }
  0xc3   :  { %v1593_v26 = vpop.permute.xlu0 %863 }
  0xc6   :  { %v1595_v27 = vpop.permute.xlu1 %725 }
  0xc7   :  { %v1609_v34 = vpop.permute.xlu0 %867 }
  0xc8   :  { %1797 = vst [vmem:[#allocation8_spill] sm:$0xff] %v1609_v34 }
  0xca   :  { %v1611_v35 = vpop.permute.xlu1 %730 }
  0xcb   :  { %v1625_v42 = vpop.permute.xlu0 %871 }
  0xce   :  { %v1627_v43 = vpop.permute.xlu1 %735 }
  0xcf   :  { %v1641_v50 = vpop.permute.xlu0 %875 }
  0xd0   :  { %1803 = vst [vmem:[#allocation14_spill] sm:$0xff] %v1641_v50 }
  0xd2   :  { %v1643_v51 = vpop.permute.xlu1 %740 }
  0xd3   :  { %1804 = vst [vmem:[#allocation15_spill] sm:$0xff] %v1643_v51  ;;  %v1660_v63 = vpop.permute.xlu0 %879 }
  0xd4   :  { %1807 = vst [vmem:[#allocation18_spill] sm:$0xff] %v1660_v63 }
  0xd6   :  { %v1662_v0 = vpop.permute.xlu1 %745 }
  0xd7   :  { %1808 = vst [vmem:[#allocation19_spill] sm:$0xff] %v1662_v0 }
  0xf5   :  { %v1171_v14 = vpop.f32.mrf.mxu0  ;;  %v1251_v15 = vpop.f32.mrf.mxu1 }
  0xf6   :  { %v651_v56 = vmul.f32 %v1251_v15, %v1171_v14 }
  0xf7   :  { %v1575_v16 = vpop.f32.mrf.mxu0  ;;  %v475_v17 = vpop.f32.mrf.mxu1 }
  0xf8   :  { %v650_v57 = vmul.f32 %v475_v17, %v1575_v16 }
  0xf9   :  { %v1581_v20 = vpop.f32.mrf.mxu0  ;;  %v1583_v21 = vpop.f32.mrf.mxu1 }
  0xfa   :  { %v653_v58 = vmul.f32 %v1583_v21, %v1581_v20 }
  0xfb   :  { %v1585_v22 = vpop.f32.mrf.mxu0  ;;  %v1587_v23 = vpop.f32.mrf.mxu1 }
  0xfc   :  { %v652_v59 = vmul.f32 %v1587_v23, %v1585_v22 }
  0xfd   :  { %v1589_v24 = vpop.f32.mrf.mxu0  ;;  %v1591_v25 = vpop.f32.mrf.mxu1 }
  0xfe   :  { %v655_v60 = vmul.f32 %v1591_v25, %v1589_v24 }
  0xff   :  { %v1597_v28 = vpop.f32.mrf.mxu0  ;;  %v1599_v29 = vpop.f32.mrf.mxu1 }
 0x100   :  { %v1666_v1 = vmul.f32 %v1599_v29, %v1597_v28 }
 0x101   :  { %v1601_v30 = vpop.f32.mrf.mxu0  ;;  %v1603_v31 = vpop.f32.mrf.mxu1 }
 0x102   :  { %v1670_v5 = vmul.f32 %v1603_v31, %v1601_v30 }
 0x103   :  { %v1605_v32 = vpop.f32.mrf.mxu0  ;;  %v1607_v33 = vpop.f32.mrf.mxu1 }
 0x105   :  { %v1613_v36 = vpop.f32.mrf.mxu0  ;;  %v1615_v37 = vpop.f32.mrf.mxu1 }
 0x107   :  { %v1617_v38 = vpop.f32.mrf.mxu0  ;;  %v1619_v39 = vpop.f32.mrf.mxu1 }
 0x108   :  { %1798 = vst [vmem:[#allocation9_spill] sm:$0xff] %v1617_v38  ;;  %1799 = vst [vmem:[#allocation10_spill] sm:$0xff] %v1619_v39  ;;  %v1682_v50 = vmul.f32 %v1619_v39, %v1617_v38 }
 0x109   :  { %v1621_v40 = vpop.f32.mrf.mxu0  ;;  %v1623_v41 = vpop.f32.mrf.mxu1 }
 0x10a   :  { %1810 = vst [vmem:[#allocation21_spill] sm:$0xff] %v1682_v50  ;;  %v1686_v0 = vmul.f32 %v1623_v41, %v1621_v40 }
 0x10b   :  { %v1629_v44 = vpop.f32.mrf.mxu0  ;;  %v1631_v45 = vpop.f32.mrf.mxu1 }
 0x10c   :  { %v1690_v34 = vmul.f32 %v1631_v45, %v1629_v44 }
 0x10d   :  { %v1633_v46 = vpop.f32.mrf.mxu0  ;;  %v1635_v47 = vpop.f32.mrf.mxu1 }
 0x10e   :  { %1800 = vst [vmem:[#allocation11_spill] sm:$0xff] %v1633_v46  ;;  %1801 = vst [vmem:[#allocation12_spill] sm:$0xff] %v1635_v47 }
 0x10f   :  { %v1637_v48 = vpop.f32.mrf.mxu0  ;;  %v1639_v49 = vpop.f32.mrf.mxu1  ;;  %1811 = vst [vmem:[#allocation22_spill] sm:$0xff] %v1690_v34 }
 0x110   :  { %1802 = vst [vmem:[#allocation13_spill] sm:$0xff] %v1637_v48 }
 0x111   :  { %v1645_v52 = vpop.f32.mrf.mxu0  ;;  %v1647_v53 = vpop.f32.mrf.mxu1 }
 0x113   :  { %v1649_v54 = vpop.f32.mrf.mxu0  ;;  %v1651_v55 = vpop.f32.mrf.mxu1 }
 0x114   :  { %1805 = vst [vmem:[#allocation16_spill] sm:$0xff] %v1649_v54  ;;  %1806 = vst [vmem:[#allocation17_spill] sm:$0xff] %v1651_v55  ;;  %v1674_v55 = vmul.f32 %v1607_v33, %v1605_v32  ;;  %v1678_v54 = vmul.f32 %v1615_v37, %v1613_v36 }
 0x115   :  { %v1195_v61 = vpop.f32.mrf.mxu0  ;;  %v1275_v62 = vpop.f32.mrf.mxu1 }
 0x116   :  { %v811_v2 = vmul.f32 %v1251_v15, %v1195_v61  ;;  %v667_v3 = vmul.f32 %v1275_v62, %v1195_v61  ;;  %v795_v4 = vmul.f32 %v1275_v62, %v1171_v14  ;;  %1809 = vst [vmem:[#allocation20_spill] sm:$0xff] %v1678_v54  ;;  %v1694_v54 = vmul.f32 %v1635_v47, %v1633_v46 }
 0x117   :  { %v330_v63 = vpop.f32.mrf.mxu0  ;;  %v555_v15 = vpop.f32.mrf.mxu1 }
 0x118   :  { %v683_v61 = vadd.f32 %v667_v3, %v651_v56  ;;  %v827_v14 = vsub.f32 %v795_v4, %v811_v2  ;;  %v810_v62 = vmul.f32 %v475_v17, %v330_v63  ;;  %v666_v51 = vmul.f32 %v555_v15, %v330_v63  ;;  %1812 = vst [vmem:[#allocation23_spill] sm:$0xff] %v1694_v54 }
 0x119   :  { %v794_v50 = vmul.f32 %v555_v15, %v1575_v16  ;;  %v1198_v38 = vpop.f32.mrf.mxu0  ;;  %v1278_v39 = vpop.f32.mrf.mxu1  ;;  %v1702_v3 = vmul.f32 %v1639_v49, %v1637_v48 }
 0x11a   :  { %v779_v56 = vmul.f32 %v1563_v8, %v683_v61  ;;  %v907_v17 = vmul.f32 %v1571_v12, %v827_v14  ;;  %v682_v63 = vadd.f32 %v666_v51, %v650_v57  ;;  %v813_v2 = vmul.f32 %v1583_v21, %v1198_v38  ;;  %v1705_v16 = vpop.permute.xlu0 %883  ;;  %v1707_v15 = vpop.permute.xlu1 %750 }
 0x11b   :  { %1813 = vst [vmem:[#allocation24_spill] sm:$0xff] %v1702_v3  ;;  %v826_v4 = vsub.f32 %v794_v50, %v810_v62  ;;  %v669_v34 = vmul.f32 %v1278_v39, %v1198_v38  ;;  %v797_v46 = vmul.f32 %v1278_v39, %v1581_v20  ;;  %v340_v54 = vpop.f32.mrf.mxu0  ;;  %v565_v47 = vpop.f32.mrf.mxu1 }
 0x11c   :  { %v923_v8 = vadd.f32 %v907_v17, %v779_v56  ;;  %v778_v12 = vmul.f32 %v1559_v6, %v682_v63  ;;  %v812_v51 = vmul.f32 %v1587_v23, %v340_v54  ;;  %v668_v21 = vmul.f32 %v565_v47, %v340_v54 }
 0x11d   :  { %v906_v57 = vmul.f32 %v1569_v11, %v826_v4  ;;  %v685_v61 = vadd.f32 %v669_v34, %v653_v58  ;;  %v829_v14 = vsub.f32 %v797_v46, %v813_v2  ;;  %v796_v38 = vmul.f32 %v565_v47, %v1585_v22  ;;  %v1201_v50 = vpop.f32.mrf.mxu0  ;;  %v1281_v20 = vpop.f32.mrf.mxu1 }
 0x11e   :  { %v684_v39 = vadd.f32 %v668_v21, %v652_v59  ;;  %v815_v62 = vmul.f32 %v1591_v25, %v1201_v50  ;;  %v671_v3 = vmul.f32 %v1281_v20, %v1201_v50  ;;  %v799_v48 = vmul.f32 %v1281_v20, %v1589_v24  ;;  %v1726_v2 = vpop.permute.xlu1 %755 }
 0x11f   :  { %v922_v56 = vadd.f32 %v906_v57, %v778_v12  ;;  %v781_v6 = vmul.f32 %v1565_v9, %v685_v61  ;;  %v909_v23 = vmul.f32 %v1579_v19, %v829_v14  ;;  %v828_v54 = vsub.f32 %v796_v38, %v812_v51  ;;  %v350_v17 = vpop.f32.mrf.mxu0  ;;  %v575_v11 = vpop.f32.mrf.mxu1 }
 0x120   :  { %v780_v34 = vmul.f32 %v1561_v7, %v684_v39  ;;  %v687_v46 = vadd.f32 %v671_v3, %v655_v60  ;;  %v831_v22 = vsub.f32 %v799_v48, %v815_v62  ;;  %v814_v47 = vmul.f32 %v1599_v29, %v350_v17  ;;  %v1724_v19 = vpop.permute.xlu0 %887 }
 0x121   :  { %v1721_v25 = vmul.f32 %v1647_v53, %v1645_v52  ;;  %v938_v58 = vadd.f32 %v923_v8, %v922_v56  ;;  %v908_v24 = vmul.f32 %v1573_v13, %v828_v54  ;;  %v670_v59 = vmul.f32 %v575_v11, %v350_v17  ;;  %v1204_v9 = vpop.f32.mrf.mxu0  ;;  %v1284_v63 = vpop.f32.mrf.mxu1 }
 0x122   :  { %v925_v4 = vadd.f32 %v909_v23, %v781_v6  ;;  %v783_v7 = vmul.f32 %v1595_v27, %v687_v46  ;;  %v798_v48 = vmul.f32 %v575_v11, %v1597_v28  ;;  %v817_v29 = vmul.f32 %v1603_v31, %v1204_v9  ;;  %v1745_v54 = vpop.permute.xlu1 %760  ;;  %v1815_v46 = vld [vmem:[#allocation10_spill] sm:$0xff] }
 0x123   :  { %v924_v60 = vadd.f32 %v908_v24, %v780_v34  ;;  %v686_v3 = vadd.f32 %v670_v59, %v1666_v1  ;;  %v673_v8 = vmul.f32 %v1284_v63, %v1204_v9  ;;  %v801_v13 = vmul.f32 %v1284_v63, %v1601_v30  ;;  %v360_v12 = vpop.f32.mrf.mxu0  ;;  %v585_v51 = vpop.f32.mrf.mxu1  ;;  %v1816_v24 = vld [vmem:[#allocation8_spill] sm:$0xff]  ;;  %v1817_v63 = vld [vmem:[#allocation9_spill] sm:$0xff] }
 0x124   :  { %v911_v21 = vmul.f32 %v1593_v26, %v831_v22  ;;  %v830_v57 = vsub.f32 %v798_v48, %v814_v47  ;;  %v816_v61 = vmul.f32 %v1607_v33, %v360_v12  ;;  %v672_v14 = vmul.f32 %v585_v51, %v360_v12  ;;  %v1819_v12 = vld [vmem:[#allocation19_spill] sm:$0xff] }
 0x125   :  { %v939_v38 = vadd.f32 %v938_v58, %v924_v60  ;;  %v782_v27 = vmul.f32 %v1567_v10, %v686_v3  ;;  %v689_v28 = vadd.f32 %v673_v8, %v1670_v5  ;;  %v833_v31 = vsub.f32 %v801_v13, %v817_v29  ;;  %v1207_v50 = vpop.f32.mrf.mxu0  ;;  %v1287_v20 = vpop.f32.mrf.mxu1  ;;  %v1818_v29 = vld [vmem:[#allocation21_spill] sm:$0xff] }
 0x126   :  { %v910_v1 = vmul.f32 %v1577_v18, %v830_v57  ;;  %v688_v30 = vadd.f32 %v672_v14, %v1674_v55  ;;  %v800_v39 = vmul.f32 %v585_v51, %v1605_v32  ;;  %v819_v26 = vmul.f32 %v1615_v37, %v1207_v50  ;;  %v1743_v5 = vpop.permute.xlu0 %891  ;;  %v1814_v37 = vld [vmem:[#allocation20_spill] sm:$0xff]  ;;  %v1820_v57 = vld [vmem:[#allocation15_spill] sm:$0xff] }
 0x127   :  { %v940_v62 = vadd.f32 %v939_v38, %v925_v4  ;;  %v785_v33 = vmul.f32 %v1627_v43, %v689_v28  ;;  %v913_v56 = vmul.f32 %v1625_v42, %v833_v31  ;;  %v675_v6 = vmul.f32 %v1287_v20, %v1207_v50  ;;  %v370_v10 = vpop.f32.mrf.mxu0  ;;  %v595_v23 = vpop.f32.mrf.mxu1 }
 0x128   :  { %v926_v17 = vadd.f32 %v910_v1, %v782_v27  ;;  %v784_v18 = vmul.f32 %v1611_v35, %v688_v30  ;;  %v832_v55 = vsub.f32 %v800_v39, %v816_v61  ;;  %v803_v32 = vmul.f32 %v1287_v20, %v1613_v36  ;;  %v1821_v1 = vld [vmem:[#allocation18_spill] sm:$0xff] }
 0x129   :  { %v927_v11 = vadd.f32 %v911_v21, %v783_v7  ;;  %v691_v34 = vadd.f32 %v675_v6, %v1814_v37  ;;  %v818_v43 = vmul.f32 %v1815_v46, %v370_v10  ;;  %v674_v22 = vmul.f32 %v595_v23, %v370_v10  ;;  %v1210_v42 = vpop.f32.mrf.mxu0  ;;  %v1290_v47 = vpop.f32.mrf.mxu1  ;;  %v1822_v39 = vld [vmem:[#allocation14_spill] sm:$0xff] }
 0x12a   :  { %v941_v58 = vadd.f32 %v940_v62, %v926_v17  ;;  %v912_v59 = vmul.f32 %v1816_v24, %v832_v55  ;;  %v835_v9 = vsub.f32 %v803_v32, %v819_v26  ;;  %v802_v4 = vmul.f32 %v595_v23, %v1817_v63  ;;  %v896_v50 = vpop.permute.xlu0 %895 }
 0x12b   :  { %v929_v48 = vadd.f32 %v913_v56, %v785_v33  ;;  %v690_v35 = vadd.f32 %v674_v22, %v1818_v29  ;;  %v821_v60 = vmul.f32 %v1623_v41, %v1210_v42  ;;  %v677_v36 = vmul.f32 %v1290_v47, %v1210_v42  ;;  %v380_v7 = vpop.f32.mrf.mxu0  ;;  %v605_v3 = vpop.f32.mrf.mxu1 }
 0x12c   :  { %v928_v8 = vadd.f32 %v912_v59, %v784_v18  ;;  %v942_v13 = vadd.f32 %v941_v58, %v927_v11  ;;  %v787_v51 = vmul.f32 %v1819_v12, %v691_v34  ;;  %v834_v21 = vsub.f32 %v802_v4, %v818_v43  ;;  %v766_v41 = vpop.permute.xlu1 %765  ;;  %v1824_v18 = vld [vmem:[#allocation22_spill] sm:$0xff]  ;;  %v1825_v34 = vld [vmem:[#allocation11_spill] sm:$0xff]  ;;  %v1827_v4 = vld [vmem:[#allocation13_spill] sm:$0xff] }
 0x12d   :  { %v786_v61 = vmul.f32 %v1820_v57, %v690_v35  ;;  %v693_v14 = vadd.f32 %v677_v36, %v1686_v0  ;;  %v805_v38 = vmul.f32 %v1290_v47, %v1621_v40  ;;  %v820_v27 = vmul.f32 %v1631_v45, %v380_v7  ;;  %v1213_v28 = vpop.f32.mrf.mxu0  ;;  %v1293_v31 = vpop.f32.mrf.mxu1  ;;  %v1823_v0 = vld [vmem:[#allocation12_spill] sm:$0xff]  ;;  %v1826_v59 = vld [vmem:[#allocation23_spill] sm:$0xff] }
 0x12e   :  { %v943_v20 = vadd.f32 %v942_v13, %v928_v8  ;;  %v915_v30 = vmul.f32 %v1821_v1, %v835_v9  ;;  %v914_v26 = vmul.f32 %v1822_v39, %v834_v21  ;;  %v676_v62 = vmul.f32 %v605_v3, %v380_v7  ;;  %v1828_v35 = vld [vmem:[#allocation16_spill] sm:$0xff]  ;;  %v900_v13 = vpop.permute.xlu0 %899 }
 0x12f   :  { %v789_v33 = vmul.f32 %v1726_v2, %v693_v14  ;;  %v837_v56 = vsub.f32 %v805_v38, %v821_v60  ;;  %v804_v6 = vmul.f32 %v605_v3, %v1629_v44  ;;  %v823_v10 = vmul.f32 %v1823_v0, %v1213_v28  ;;  %v390_v40 = vpop.f32.mrf.mxu0  ;;  %v615_v23 = vpop.f32.mrf.mxu1  ;;  %v1829_v60 = vld [vmem:[#allocation17_spill] sm:$0xff]  ;;  %v1830_v7 = vld [vmem:[#allocation24_spill] sm:$0xff] }
 0x130   :  { %v930_v45 = vadd.f32 %v914_v26, %v786_v61  ;;  %v944_v17 = vadd.f32 %v943_v20, %v929_v48  ;;  %v692_v55 = vadd.f32 %v676_v62, %v1824_v18  ;;  %v679_v32 = vmul.f32 %v1293_v31, %v1213_v28 }
 0x131   :  { %v917_v11 = vmul.f32 %v1724_v19, %v837_v56  ;;  %v836_v37 = vsub.f32 %v804_v6, %v820_v27  ;;  %v807_v46 = vmul.f32 %v1293_v31, %v1825_v34  ;;  %v822_v43 = vmul.f32 %v1639_v49, %v390_v40  ;;  %v1216_v2 = vpop.f32.mrf.mxu0  ;;  %v1296_v22 = vpop.f32.mrf.mxu1 }
 0x132   :  { %v931_v42 = vadd.f32 %v915_v30, %v787_v51  ;;  %v945_v44 = vadd.f32 %v944_v17, %v930_v45  ;;  %v788_v47 = vmul.f32 %v1707_v15, %v692_v55  ;;  %v678_v58 = vmul.f32 %v615_v23, %v390_v40  ;;  %v771_v15 = vpop.permute.xlu1 %770  ;;  %v904_v56 = vpop.permute.xlu0 %903 }
 0x133   :  { %v916_v24 = vmul.f32 %v1705_v16, %v836_v37  ;;  %v695_v9 = vadd.f32 %v679_v32, %v1826_v59  ;;  %v839_v63 = vsub.f32 %v807_v46, %v823_v10  ;;  %v806_v48 = vmul.f32 %v615_v23, %v1827_v4  ;;  %v400_v19 = vpop.f32.mrf.mxu0  ;;  %v625_v29 = vpop.f32.mrf.mxu1 }
 0x134   :  { %v664_v36 = vmul.f32 %v1829_v60, %v1828_v35  ;;  %v946_v49 = vadd.f32 %v945_v44, %v931_v42  ;;  %v694_v3 = vadd.f32 %v678_v58, %v1830_v7  ;;  %v825_v8 = vmul.f32 %v1647_v53, %v1216_v2 }
 0x135   :  { %v933_v12 = vadd.f32 %v917_v11, %v789_v33  ;;  %v932_v51 = vadd.f32 %v916_v24, %v788_v47  ;;  %v838_v16 = vsub.f32 %v806_v48, %v822_v43  ;;  %v681_v21 = vmul.f32 %v1296_v22, %v1216_v2 }
 0x136   :  { %v790_v57 = vmul.f32 %v1745_v54, %v694_v3  ;;  %v809_v61 = vmul.f32 %v1296_v22, %v1645_v52  ;;  %v824_v14 = vmul.f32 %v1829_v60, %v400_v19  ;;  %v680_v38 = vmul.f32 %v625_v29, %v400_v19  ;;  %v776_v52 = vpop.permute.xlu1 %775 }
 0x137   :  { %v947_v27 = vadd.f32 %v946_v49, %v932_v51  ;;  %v791_v28 = vmul.f32 %v766_v41, %v695_v9  ;;  %v919_v31 = vmul.f32 %v896_v50, %v839_v63  ;;  %v918_v20 = vmul.f32 %v1743_v5, %v838_v16 }
 0x138   :  { %v697_v53 = vadd.f32 %v681_v21, %v1721_v25  ;;  %v841_v1 = vsub.f32 %v809_v61, %v825_v8  ;;  %v696_v30 = vadd.f32 %v680_v38, %v664_v36  ;;  %v808_v39 = vmul.f32 %v625_v29, %v1828_v35 }
 0x139   :  { %v934_v26 = vadd.f32 %v918_v20, %v790_v57  ;;  %v948_v62 = vadd.f32 %v947_v27, %v933_v12  ;;  %v935_v6 = vadd.f32 %v919_v31, %v791_v28 }
 0x13a   :  { %v792_v33 = vmul.f32 %v771_v15, %v696_v30  ;;  %v840_v54 = vsub.f32 %v808_v39, %v824_v14  ;;  %v793_v10 = vmul.f32 %v776_v52, %v697_v53  ;;  %v921_v40 = vmul.f32 %v904_v56, %v841_v1 }
 0x13b   :  { %v949_v0 = vadd.f32 %v948_v62, %v934_v26 }
 0x13c   :  { %v920_v41 = vmul.f32 %v900_v13, %v840_v54  ;;  %v937_v5 = vadd.f32 %v921_v40, %v793_v10 }
 0x13d   :  { %v950_v50 = vadd.f32 %v949_v0, %v935_v6 }
 0x13e   :  { %v936_v23 = vadd.f32 %v920_v41, %v792_v33 }
 0x140   :  { %v951_v45 = vadd.f32 %v950_v50, %v936_v23 }
 0x142   :  { %v952_v25 = vadd.f32 %v951_v45, %v937_v5 }
 0x144   :  { %v953_v17 = vrot.slane %v952_v25, 4 }
 0x146   :  { %v954_v18 = vadd.f32 %v953_v17, %v952_v25 }
 0x148   :  { %v955_v55 = vrot.slane %v954_v18, 2 }
 0x14a   :  { %v956_v32 = vadd.f32 %v955_v55, %v954_v18 }
 0x14c   :  { %v957_v11 = vrot.slane %v956_v32, 1 }
 0x14e   :  { %v958_v37 = vadd.f32 %v957_v11, %v956_v32 }
 0x150   :  { %959 = vst [vmem:[#allocation5] sm:$0x1] %v958_v37 }
 0x151   :  { %1340 = shalt.err (!%p1337_p9)
}
 0x152   :  { %969 = dma.vmem_to_hbm [thread:$0]  %s967_s24, 16, %s1789_s3, [#allocation4]  }
 0x153   :  { %1351 = dma.done.wait [#allocation4], 16  }
 0x154   :  { %1352 = vsyncadd [#allocation4], 4294967280 }
 0x155   :  { %973 = vsyncpa [#allocation3], 1 }
 0x156   :  { %974 = vsyncpa [#allocation4], 1 }

</bundles_post_ra>
